<compile_context>
chip_gen: v7x
topology: tpu7x:2x2x1
jax: 0.10.0
libtpu: 0.0.40
codegen_flags: <defaults>
</compile_context>

<pallas_src>
import jax
import jax.numpy as jnp
from jax.experimental import pallas as pl
from jax.experimental.pallas import tpu as pltpu


def _round_up(x: int, m: int) -> int:
    return ((x + m - 1) // m) * m


def _l1_penalty_kernel(x_ref, init_ref, sel_ref, out_ref):
    # x_ref:    (TB, Q*D)  folded inputs (q folded into the lane axis)
    # init_ref: (1,  Q*D)  reference point tiled q times (broadcast over rows)
    # sel_ref:  (Q*D, Q)   f32 block-diagonal selector: sel[q*D + d, q] = 1
    # out_ref:  (TB, 1)    per-batch-row result
    x = x_ref[...].astype(jnp.float32)
    ip = init_ref[...].astype(jnp.float32)
    a = jnp.abs(x - ip)                                          # (TB, Q*D), VPU
    # Segment-sum over each length-D slice on the (otherwise idle) MXU:
    #   seg[b, q] = sum_d |x[b, q, d] - init[d]|
    seg = jnp.dot(a, sel_ref[...],
                  preferred_element_type=jnp.float32)            # (TB, Q)
    out_ref[...] = jnp.max(seg, axis=-1, keepdims=True).astype(out_ref.dtype)


def l1_penalty(
    X: jax.Array,
    init_point: jax.Array,
    *,
    max_tile_bytes: int | None = None,   # per X buffer; auto if None
) -> jax.Array:
    """X: (*batch_shape, q, dim); init_point: (1, dim); returns batch_shape."""
    *batch_shape, Q, D = X.shape
    batch_shape = tuple(batch_shape)
    B = 1
    for s in batch_shape:
        B *= s

    QD = Q * D
    Xf = X.reshape(B, QD)                                   # free, contiguous fold
    init_tiled = jnp.tile(init_point.reshape(1, D), (1, Q))  # (1, Q*D)

    # Block-diagonal ones selector for the per-q segment sum on the MXU.
    seg_id = jnp.arange(QD, dtype=jnp.int32) // D
    sel = (seg_id[:, None] == jnp.arange(Q, dtype=jnp.int32)[None, :]
           ).astype(jnp.float32)                             # (Q*D, Q)

    itemsize = Xf.dtype.itemsize
    sublane = max(8, 32 // itemsize)          # 8 f32, 16 bf16/f16, 32 int8/fp8
    qd_pad = _round_up(QD, 128)               # lane padding of the minor dim
    row_bytes = qd_pad * itemsize             # one VMEM-resident row of the X tile

    try:
        vmem_cap = int(pltpu.get_tpu_info().vmem_capacity_bytes)
    except Exception:
        vmem_cap = 64 << 20                   # conservative (v7x per-TC)
    if max_tile_bytes is None:
        # 128 MiB parts (v5e/v6e) can afford bigger tiles than v7x (64 MiB).
        max_tile_bytes = (16 << 20) if vmem_cap >= (96 << 20) else (8 << 20)

    # Batch-tile size: largest sublane multiple fitting the per-buffer budget,
    # clamped to the batch, and capped so there are >= 2 grid steps when the
    # batch allows it (keeps both TensorCores busy on v7x).
    tb = max(sublane, (max_tile_bytes // row_bytes) // sublane * sublane)
    tb = min(tb, _round_up(B, sublane))
    if B >= 2 * sublane:
        tb = min(tb, _round_up(pl.cdiv(B, 2), sublane))
    n_tiles = pl.cdiv(B, tb)
    # TODO(synk): if a single sublane-row tile exceeds the VMEM budget (huge
    # q*dim), add an inner "arbitrary" grid axis over q with a running-max
    # scratch instead of relying on a larger VMEM limit.

    # Layout-aware VMEM accounting (x2: the pipeline double-buffers each block).
    x_block = tb * qd_pad * itemsize
    init_block = sublane * qd_pad * init_tiled.dtype.itemsize
    sel_block = _round_up(QD, 8) * _round_up(Q, 128) * 4
    out_block = tb * 128 * itemsize
    vmem_needed = 2 * (x_block + init_block + sel_block + out_block)
    vmem_limit = int(min(max(vmem_needed + (4 << 20), 16 << 20),
                         (vmem_cap * 3) // 4))

    out2d = pl.pallas_call(
        _l1_penalty_kernel,
        out_shape=jax.ShapeDtypeStruct((B, 1), X.dtype),
        grid_spec=pltpu.PrefetchScalarGridSpec(
            num_scalar_prefetch=0,
            grid=(n_tiles,),
            in_specs=[
                pl.BlockSpec((tb, QD), lambda i: (i, 0)),   # X tile (ragged last)
                pl.BlockSpec((1, QD), lambda i: (0, 0)),    # init (fetched once)
                pl.BlockSpec((QD, Q), lambda i: (0, 0)),    # selector (fetched once)
            ],
            out_specs=pl.BlockSpec((tb, 1), lambda i: (i, 0)),
        ),
        compiler_params=pltpu.CompilerParams(
            dimension_semantics=("parallel",),
            vmem_limit_bytes=vmem_limit,
        ),
    )(Xf, init_tiled, sel)

    # Last-tile garbage rows (if any) were written out of bounds and dropped;
    # only the valid B rows exist in out2d.
    return out2d[:, 0].reshape(batch_shape)


if __name__ == "__main__":
    key = jax.random.PRNGKey(0)
    kx, ki = jax.random.split(key)

    # Small deterministic shapes; B = 3*7 = 21 exercises the ragged last tile
    # (no jnp.pad of X) and the multi-step "parallel" grid.
    batch_shape, q, dim = (3, 7), 5, 32
    X = jax.random.normal(kx, (*batch_shape, q, dim), dtype=jnp.float32)
    init_point = jax.random.normal(ki, (1, dim), dtype=jnp.float32)

    out = l1_penalty(X, init_point)
    out = jax.block_until_ready(out)

    # Pure-JAX reference (same math as the PyTorch L1Penalty module).
    ref = jnp.max(jnp.sum(jnp.abs(X - init_point), axis=-1), axis=-1)
    assert out.shape == batch_shape, out.shape
    # Tolerance allows for the MXU's multi-pass f32 segment-sum; a semantic
    # error (wrong norm / reduction axis) would be orders of magnitude larger.
    assert jnp.allclose(out, ref, rtol=1e-2, atol=1e-2), (out, ref)

    print("KERNEL_OK")
</pallas_src>

<mosaic_0001>
module attributes {stable_mosaic.version = 11 : i64} {
  func.func @_l1_penalty_kernel(%arg0: i32, %arg1: memref<16x160xf32, #tpu.memory_space<vmem>>, %arg2: memref<1x160xf32, #tpu.memory_space<vmem>>, %arg3: memref<160x5xf32, #tpu.memory_space<vmem>>, %arg4: memref<16x1xf32, #tpu.memory_space<vmem>>) attributes {dimension_semantics = [#tpu.dimension_semantics<parallel>], iteration_bounds = array<i64: 2>, scalar_prefetch = 0 : i64, scratch_operands = 0 : i64, tpu.core_type = #tpu.core_type<tc>, window_params = [{transform_indices = @transform_0, window_bounds = array<i64: 16, 160>}, {pipeline_mode = #tpu.pipeline_mode<synchronous>, transform_indices = @transform_1, window_bounds = array<i64: 1, 160>}, {pipeline_mode = #tpu.pipeline_mode<synchronous>, transform_indices = @transform_2, window_bounds = array<i64: 160, 5>}, {transform_indices = @transform_3, window_bounds = array<i64: 16, 1>}]} {
    %c0 = arith.constant 0 : index
    %c0_0 = arith.constant 0 : index
    %0 = vector.load %arg1[%c0, %c0_0] : memref<16x160xf32, #tpu.memory_space<vmem>>, vector<16x160xf32>
    %c0_1 = arith.constant 0 : index
    %c0_2 = arith.constant 0 : index
    %1 = vector.load %arg2[%c0_1, %c0_2] : memref<1x160xf32, #tpu.memory_space<vmem>>, vector<1x160xf32>
    %2 = vector.broadcast %1 : vector<1x160xf32> to vector<16x160xf32>
    %3 = arith.subf %0, %2 : vector<16x160xf32>
    %4 = math.absf %3 : vector<16x160xf32>
    %c0_3 = arith.constant 0 : index
    %c0_4 = arith.constant 0 : index
    %5 = vector.load %arg3[%c0_3, %c0_4] : memref<160x5xf32, #tpu.memory_space<vmem>>, vector<160x5xf32>
    %cst = arith.constant dense<0.000000e+00> : vector<16x5xf32>
    %6 = tpu.matmul %4, %5, %cst {dimension_numbers = #tpu.dot_dimension_numbers<[1], [0], [0], [1], [0, 0, 1, 1], [], []>} : vector<16x160xf32>, vector<160x5xf32>, vector<16x5xf32> -> vector<16x5xf32>
    %cst_5 = arith.constant dense<0xFF800000> : vector<16xf32>
    %7 = vector.multi_reduction <maximumf>, %6, %cst_5 [1] : vector<16x5xf32> to vector<16xf32>
    %8 = vector.shape_cast %7 : vector<16xf32> to vector<16x1xf32>
    %c0_6 = arith.constant 0 : index
    %c0_7 = arith.constant 0 : index
    %9 = vector.load %arg4[%c0_6, %c0_7] : memref<16x1xf32, #tpu.memory_space<vmem>>, vector<16x1xf32>
    tpu.vector_store %arg4[%c0_6, %c0_7], %8 {strides = array<i32>} : memref<16x1xf32, #tpu.memory_space<vmem>>, vector<16x1xf32>,
    return
  }
  func.func @transform_0(%arg0: i32) -> (i32, i32) {
    %c0_i32 = arith.constant 0 : i32
    %c0_i32_0 = arith.constant 0 : i32
    return %arg0, %c0_i32 : i32, i32
  }
  func.func @transform_1(%arg0: i32) -> (i32, i32) {
    %c0_i32 = arith.constant 0 : i32
    %c0_i32_0 = arith.constant 0 : i32
    %c0_i32_1 = arith.constant 0 : i32
    return %c0_i32, %c0_i32_0 : i32, i32
  }
  func.func @transform_2(%arg0: i32) -> (i32, i32) {
    %c0_i32 = arith.constant 0 : i32
    %c0_i32_0 = arith.constant 0 : i32
    %c0_i32_1 = arith.constant 0 : i32
    return %c0_i32, %c0_i32_0 : i32, i32
  }
  func.func @transform_3(%arg0: i32) -> (i32, i32) {
    %c0_i32 = arith.constant 0 : i32
    %c0_i32_0 = arith.constant 0 : i32
    return %arg0, %c0_i32 : i32, i32
  }
}

</mosaic_0001>

<bundles_post_ra>
// kernel: tpu_custom_call.1
= control target key start
LH: loop header
LB: loop body
LE: loop exit
PB: predicated region body
PF: predicated region fallthrough
CT: control target
= control target key end

     0   :  { %s834_s12 = smov 0   ;;  %s836_s13 = smov 0   ;;  %s1010_s0 = inlined_call_operand.vmem [shape: f32[21,160], index: 0, kind: input, shape index: {}]   ;;  %s1011_s1 = inlined_call_operand.vmem [shape: f32[1,160], index: 1, kind: input, shape index: {}]   ;;  %s1012_s2 = inlined_call_operand.vmem [shape: f32[160,5], index: 2, kind: input, shape index: {}]   ;;  %s1013_s3 = inlined_call_operand.vmem [shape: f32[21,1], index: 3, kind: output, shape index: {}]  }
   0x1   :  { %s838_s14 = smov 0  }
   0x2 LB: > { %s847_s15 = sadd.s32 4294967295, %s779_s14   ;;  %s849_s16 = sadd.s32 1, %s779_s14   ;;  %s779_s14 = sphi %s838_s14, %s1017_s14   ;;  %s775_s13 = sphi %s836_s13, %s1016_s13   ;;  %s771_s12 = sphi %s834_s12, %s1015_s12  }
   0x3   : > { %s85_s17 = ssub.s32 %s779_s14, %s849_s16  ;;  %s88_s18 = sadd.s32 1, %s775_s13 }
   0x4   : > { %p86_p0 = scmp.eq.s32.totalorder %s85_s17, 0  ;;  %p98_p1 = scmp.ne.s32.totalorder %s775_s13, %s771_s12 }
   0x5   : > { %p99_p2 = scmp.eq.s32.totalorder %s847_s15, 1  ;;  %p558_p3 = scmp.ge.s32.totalorder %s779_s14, 1 }
   0x6   : > { %s857_s19 = scalar_select %p86_p0, %s775_s13, %s88_s18  }
   0x7   : > { %p859_p4 = por %p99_p2, %p98_p1  ;;  %p149_p5 = scmp.lt.s32.totalorder %s779_s14, 3 }
   0x9   : > { %p150_p6 = pnand %p558_p3, %p149_p5 }
   0xa   : > { %v224_v0 = vld [vmem:[%s1012_s2] sm:$0xff] (!%p150_p6)  ;;  %v225_v1 = vld [vmem:[%s1012_s2 + $0x8] sm:$0xff] (!%p150_p6)  ;;  %v226_v2 = vld [vmem:[%s1012_s2 + $0x10] sm:$0xff] (!%p150_p6)  ;;  %s873_s27 = sshll.u32 (!%p150_p6), %s847_s15, 1  ;;  %v206_v3 = vlaneseq (!%p150_p6)  ;;  %v813_v4 = vmov (!%p150_p6), 0.0|0.0   ;;  %vm244_vm0 = vcmask (!%p150_p6), 261120  }
   0xb   : > { %153 = sbr.rel (%p150_p6) target bundleno = 461 (0x1cd), region = 32  ;;  %586 = vmatprep.subr.bf16.mxu0 (!%p150_p6), %v813_v4  ;;  %v587_v5 = vpack.c.bf16 (!%p150_p6), %v225_v1, %v224_v0  ;;  %616 = vmatprep.subr.bf16.mxu1 (!%p150_p6), %v813_v4  ;;  %v227_v6 = vld [vmem:[%s1012_s2 + $0x18] sm:$0xff] (!%p150_p6)  ;;  %p184_p7 = scmp.lt.s32.totalorder (!%p150_p6), %s873_s27, 2  ;;  %v228_v9 = vld [vmem:[%s1012_s2 + $0x20] sm:$0xff] (!%p150_p6)  ;;  %v229_v10 = vld [vmem:[%s1012_s2 + $0x28] sm:$0xff] (!%p150_p6)  ;;  %vm326_vm1 = vcmask (!%p150_p6), 39936  }
   0xc   : > { %v881_v7 = vshrl.u32 (!%p150_p6), %v206_v3, 7  ;;  %v590_v8 = vpack.c.bf16 (!%p150_p6), %v227_v6, %v226_v2  ;;  %v204_v12 = vld [vmem:[%s1011_s1] sm:$0x3] (!%p150_p6)  ;;  %v593_v13 = vpack.c.bf16 (!%p150_p6), %v229_v10, %v228_v9  ;;  %v230_v17 = vld [vmem:[%s1012_s2 + $0x30] sm:$0xff] (!%p150_p6)  ;;  %v231_v18 = vld [vmem:[%s1012_s2 + $0x38] sm:$0xff] (!%p150_p6)  ;;  %vm333_vm2 = vcmask (!%p150_p6), 7168  }
   0xd   : > { %588 = vmatpush1.bf16.msra.mxu0 (!%p150_p6), %v587_v5  ;;  %626 = vmatpush1.bf16.msra.mxu1 (!%p150_p6), %v587_v5  ;;  %v596_v21 = vpack.c.bf16 (!%p150_p6), %v231_v18, %v230_v17  ;;  %v232_v24 = vld [vmem:[%s1012_s2 + $0x40] sm:$0xff] (!%p150_p6)  ;;  %v233_v25 = vld [vmem:[%s1012_s2 + $0x48] sm:$0xff] (!%p150_p6)  ;;  %v234_v27 = vld [vmem:[%s1012_s2 + $0x50] sm:$0xff] (!%p150_p6) }
   0xe   : > { %589 = vmatprep.subr.bf16.mxu0 (!%p150_p6), %v813_v4  ;;  %617 = vmatprep.subr.bf16.mxu1 (!%p150_p6), %v813_v4  ;;  %v212_v11 = vsub.s32 (!%p150_p6), 1, %v881_v7  ;;  %v599_v26 = vpack.c.bf16 (!%p150_p6), %v233_v25, %v232_v24  ;;  %v235_v28 = vld [vmem:[%s1012_s2 + $0x58] sm:$0xff] (!%p150_p6)  ;;  %v236_v30 = vld [vmem:[%s1012_s2 + $0x60] sm:$0xff] (!%p150_p6)  ;;  %v237_v31 = vld [vmem:[%s1012_s2 + $0x68] sm:$0xff] (!%p150_p6)  ;;  %v208_v35 = vsub.s32 (!%p150_p6), 0, %v881_v7 }
   0xf   : > { %v602_v29 = vpack.c.bf16 (!%p150_p6), %v235_v28, %v234_v27  ;;  %v605_v32 = vpack.c.bf16 (!%p150_p6), %v237_v31, %v236_v30  ;;  %v238_v33 = vld [vmem:[%s1012_s2 + $0x70] sm:$0xff] (!%p150_p6)  ;;  %v239_v34 = vld [vmem:[%s1012_s2 + $0x78] sm:$0xff] (!%p150_p6)  ;;  %v240_v37 = vld [vmem:[%s1012_s2 + $0x80] sm:$0xff] (!%p150_p6) }
  0x10   : > { %v213_v15 = vrot.slane (!%p150_p6), %v204_v12, %v212_v11  ;;  %v608_v36 = vpack.c.bf16 (!%p150_p6), %v239_v34, %v238_v33  ;;  %v241_v38 = vld [vmem:[%s1012_s2 + $0x88] sm:$0xff] (!%p150_p6)  ;;  %v209_v39 = vrot.slane (!%p150_p6), %v204_v12, %v208_v35  ;;  %v242_v43 = vld [vmem:[%s1012_s2 + $0x90] sm:$0xff] (!%p150_p6)  ;;  %v243_v44 = vld [vmem:[%s1012_s2 + $0x98] sm:$0xff] (!%p150_p6) }
  0x11   : > { %591 = vmatpush1.bf16.msra.mxu0 (!%p150_p6), %v590_v8  ;;  %627 = vmatpush1.bf16.msra.mxu1 (!%p150_p6), %v590_v8  ;;  %v611_v40 = vpack.c.bf16 (!%p150_p6), %v241_v38, %v240_v37  ;;  %v614_v47 = vpack.c.bf16 (!%p150_p6), %v243_v44, %v242_v43 }
  0x12   : > { %s185_s30 = scalar_select %p184_p7, %s873_s27, 2  ;;  %592 = vmatprep.subr.bf16.mxu0 %v813_v4  ;;  %618 = vmatprep.subr.bf16.mxu1 %v813_v4 }
  0x13   : > { %s344_s5 = ssub.s32 (%p859_p4), 3, %s873_s27  ;;  %s583_s6 = sshll.u32 (%p859_p4), %s847_s15, 4 }
  0x14   : > { %s582_s8 = sshll.u32 %s185_s30, 4  ;;  %p345_p8 = scmp.lt.s32.totalorder (%p859_p4), %s344_s5, 2 }
  0x15   : > { %s896_s11 = scalar_lea.vmem %s1010_s0, %s582_s8  ;;  %594 = vmatpush1.bf16.msra.mxu0 %v593_v13  ;;  %628 = vmatpush1.bf16.msra.mxu1 %v593_v13  ;;  %s976_s8 = scalar_lea.vmem (%p859_p4), %s1013_s3, %s583_s6  }
  0x16   : > { %v201_v14 = vld [vmem:[%s896_s11 + $0x8] sm:$0xff]  ;;  %v203_v16 = vld [vmem:[%s896_s11 + $0x18] sm:$0xff]  ;;  %595 = vmatprep.subr.bf16.mxu0 %v813_v4  ;;  %619 = vmatprep.subr.bf16.mxu1 %v813_v4  ;;  %v200_v41 = vld [vmem:[%s896_s11] sm:$0xff] }
  0x17   : > { %v217_v19 = vsub.f32 %v201_v14, %v213_v15  ;;  %v219_v20 = vsub.f32 %v203_v16, %v213_v15  ;;  %v202_v42 = vld [vmem:[%s896_s11 + $0x10] sm:$0xff]  ;;  %v216_v45 = vsub.f32 %v200_v41, %v209_v39  ;;  %s175_s11 = sand.u32 1, %s771_s12  }
  0x18   : > { %v218_v46 = vsub.f32 %v202_v42, %v209_v39  ;;  %s559_s30 = sshll.u32 %s175_s11, 4 }
  0x19   : > { %v221_v22 = vand.u32 2147483647, %v217_v19  ;;  %v223_v23 = vand.u32 2147483647, %v219_v20  ;;  %597 = vmatpush1.bf16.msra.mxu0 %v596_v21  ;;  %629 = vmatpush1.bf16.msra.mxu1 %v596_v21  ;;  %v220_v48 = vand.u32 2147483647, %v216_v45 }
  0x1a   : > { %598 = vmatprep.subr.bf16.mxu0 %v813_v4  ;;  %620 = vmatprep.subr.bf16.mxu1 %v813_v4  ;;  %v222_v49 = vand.u32 2147483647, %v218_v46  ;;  %s965_s4 = scalar_lea.vmem [#allocation2], %s559_s30  }
  0x1b   : > { %563 = vmatprep.mubr.msk.f32.mxu0 %vm244_vm0, %v221_v22  ;;  %564 = vmatprep.mubr.msk.f32.mxu1 %vm244_vm0, %v223_v23 }
  0x1d   : > { %600 = vmatpush1.bf16.msra.mxu0 %v599_v26  ;;  %630 = vmatpush1.bf16.msra.mxu1 %v599_v26 }
  0x1e   : > { %601 = vmatprep.subr.bf16.mxu0 %v813_v4  ;;  %621 = vmatprep.subr.bf16.mxu1 %v813_v4 }
  0x21   : > { %603 = vmatpush1.bf16.msra.mxu0 %v602_v29  ;;  %631 = vmatpush1.bf16.msra.mxu1 %v602_v29 }
  0x22   : > { %604 = vmatprep.subr.bf16.mxu0 %v813_v4  ;;  %622 = vmatprep.subr.bf16.mxu1 %v813_v4 }
  0x25   : > { %606 = vmatpush1.bf16.msra.mxu0 %v605_v32  ;;  %632 = vmatpush1.bf16.msra.mxu1 %v605_v32 }
  0x26   : > { %607 = vmatprep.subr.bf16.mxu0 %v813_v4  ;;  %623 = vmatprep.subr.bf16.mxu1 %v813_v4 }
  0x29   : > { %609 = vmatpush1.bf16.msra.mxu0 %v608_v36  ;;  %633 = vmatpush1.bf16.msra.mxu1 %v608_v36 }
  0x2a   : > { %610 = vmatprep.subr.bf16.mxu0 %v813_v4  ;;  %624 = vmatprep.subr.bf16.mxu1 %v813_v4 }
  0x2d   : > { %612 = vmatpush1.bf16.msra.mxu0 %v611_v40  ;;  %634 = vmatpush1.bf16.msra.mxu1 %v611_v40 }
  0x2e   : > { %613 = vmatprep.subr.bf16.mxu0 %v813_v4  ;;  %625 = vmatprep.subr.bf16.mxu1 %v813_v4 }
  0x31   : > { %615 = vmatpush1.bf16.msra.mxu0 %v614_v47  ;;  %635 = vmatpush1.bf16.msra.mxu1 %v614_v47 }
  0x34   : > { %316 = vmatmul.mubr.f32.vlgmr.msra.gmra.mrb[0].mxu0 %v220_v48  ;;  %321 = vmatmul.mubr.f32.vlgmr.msra.gmra.mrb[0].mxu1 %v222_v49 }
 0x107   : > { %v317_v50 = vpop.f32.mrb[0].mxu0  ;;  %v322_v51 = vpop.f32.mrb[0].mxu1 }
 0x108   : > { %v319_v52 = vpop.f32.mrb[1].mxu0  ;;  %v327_v53 = vsel %vm326_vm1, %v317_v50, -inf  ;;  %v324_v54 = vpop.f32.mrb[1].mxu1  ;;  %v330_v55 = vsel %vm326_vm1, %v322_v51, -inf }
 0x109   : > { %328 = vmax.xlane.f32.xlu0 %v327_v53 }
 0x10d   : > { %331 = vmax.xlane.f32.xlu0 %v330_v55 }
 0x195   : > { %342 = sbr.rel (!%p859_p4) target bundleno = 461 (0x1cd), region = 36 }
 0x196   : > { %v329_v56 = vpop.xlane.xlu0 %328 }
 0x197   : > { %334 = vst.msk [vmem:[%s965_s4] sm:$0xff] %vm333_vm2, %v329_v56 }
 0x19a   : > { %v332_v57 = vpop.xlane.xlu0 %331 }
 0x19b   : > { %335 = vst.msk [vmem:[%s965_s4 + $0x8] sm:$0xff] %vm333_vm2, %v332_v57 }
 0x19c   : > { %s1019_s5 = smov (!%p345_p8, %s344_s5), 2 }
 0x19d   : > { %s567_s9 = sshll.u32 %s1019_s5, 7 }
 0x19e   : > { %p570_p9 = scmp.eq.s32.totalorder %s567_s9, 0 }
 0x19f   : > { %s982_s10 = sshrl.u32 (!%p570_p9), %s1019_s5, 1 }
 0x1a0   : > { %353 = sbr.rel (%p570_p9) target bundleno = 461 (0x1cd), region = 40  ;;  %p571_p10 = scmp.le.s32.totalorder (!%p570_p9), %s982_s10, 0 }
 0x1a7   : > { %511 = sbr.rel (%p571_p10) target bundleno = 440 (0x1b8), region = 116  ;;  %s781_s15 = smov (!%p571_p10), %s976_s8  }
 0x1a8   : > { %s785_s20 = smov (!%p571_p10), %s965_s4   ;;  %s789_s27 = smov (!%p571_p10), 0  }
 0x1a9   : > { %s793_s14 = smov (!%p571_p10), 0  }
 0x1ae LB: >> { %v417_v58 = vld [vmem:[%s787_s20] sm:$0xff]  ;;  %v419_v59 = vld [vmem:[%s787_s20 + $0x8] sm:$0xff]  ;;  %s421_s17 = sadd.s32 1, %s791_s27  ;;  %s411_s14 = sadd.s32 1, %s795_s14   ;;  %s795_s14 = sphi %s793_s14, %s411_s14   ;;  %s791_s27 = sphi %s789_s27, %s790_s27   ;;  %s787_s20 = sphi %s785_s20, %s426_s20   ;;  %s783_s15 = sphi %s781_s15, %s427_s15  }
 0x1af   : >> { %418 = vst [vmem:[%s783_s15] sm:$0xff] %v417_v58  ;;  %420 = vst [vmem:[%s783_s15 + $0x8] sm:$0xff] %v419_v59  ;;  %p422_p11 = scmp.ge.s32.totalorder %s421_s17, %s982_s10  ;;  %p410_p12 = scmp.ge.s32.totalorder %s411_s14, %s982_s10 }
 0x1b1   : >> { %s1021_s17 = smov (%p422_p11, %s421_s17), 0  ;;  %413 = sbr.rel (!%p410_p12) target bundleno = 430 (0x1ae), region = 122 }
 0x1b2   : >> { %s572_s18 = sshll.u32 %s1021_s17, 4  ;;  %s790_s27 = smov %s1021_s17  }
 0x1b3   : >> { %s426_s20 = scalar_lea.vmem %s965_s4, %s572_s18 [#allocation2]   ;;  %s427_s15 = scalar_lea.vmem %s976_s8, %s572_s18  }
 0x1b8 PF: > { %s992_s21 = sand.u32 1, %s1019_s5   ;;  %s584_s22 = sshll.u32 %s982_s10, 4 }
 0x1b9   : > { %s432_s23 = scalar_lea.vmem %s965_s4, %s584_s22 [#allocation2]   ;;  %s434_s24 = scalar_lea.vmem %s976_s8, %s584_s22  }
 0x1ba   : > { %p577_p13 = scmp.le.s32.totalorder %s992_s21, 0 }
 0x1bb   : > { %s797_s25 = smov (!%p577_p13), %s434_s24   ;;  %s801_s26 = smov (!%p577_p13), %s432_s23  }
 0x1bc   : > { %525 = sbr.rel (%p577_p13) target bundleno = 461 (0x1cd), region = 127  ;;  %s805_s28 = smov (!%p577_p13), 0  }
 0x1bd   : > { %s809_s29 = smov (!%p577_p13), 0  }
 0x1c3 LB: >> { %v444_v60 = vld [vmem:[%s803_s26] sm:$0xff]  ;;  %s446_s11 = sadd.s32 1, %s807_s28  ;;  %s438_s29 = sadd.s32 1, %s811_s29   ;;  %s811_s29 = sphi %s809_s29, %s438_s29   ;;  %s807_s28 = sphi %s805_s28, %s806_s28   ;;  %s803_s26 = sphi %s801_s26, %s451_s26   ;;  %s799_s25 = sphi %s797_s25, %s452_s25  }
 0x1c4   : >> { %445 = vst [vmem:[%s799_s25] sm:$0xff] %v444_v60  ;;  %p447_p0 = scmp.ge.s32.totalorder %s446_s11, %s992_s21  ;;  %p437_p1 = scmp.ge.s32.totalorder %s438_s29, %s992_s21 }
 0x1c6   : >> { %s1023_s11 = smov (%p447_p0, %s446_s11), 0  ;;  %440 = sbr.rel (!%p437_p1) target bundleno = 451 (0x1c3), region = 133 }
 0x1c7   : >> { %s578_s30 = sshll.u32 %s1023_s11, 3  ;;  %s806_s28 = smov %s1023_s11  }
 0x1c8   : >> { %s451_s26 = scalar_lea.vmem %s432_s23, %s578_s30 [#allocation2]   ;;  %s452_s25 = scalar_lea.vmem %s434_s24, %s578_s30  }
 0x1cd PF: > { %p10_p2 = scmp.ge.s32.totalorder %s849_s16, 4   ;;  %s1015_s12 = smov %s775_s13 }
 0x1ce   : > { %s1016_s13 = smov %s857_s19  ;;  %s1017_s14 = smov %s849_s16 }
 0x1cf   :  { %12 = sbr.rel (!%p10_p2) target bundleno = 2 (0x2), region = 144 }

</bundles_post_ra>
